<compile_context>
chip_gen: v5e
topology: v5e:2x2
jax: 0.10.0
libtpu: 0.0.40
codegen_flags: <defaults>
</compile_context>

<pallas_src>
import math
import functools

import jax
import jax.numpy as jnp
from jax import lax
from jax.experimental import pallas as pl
from jax.experimental.pallas import tpu as pltpu


# ----------------------------------------------------------------------------
# Shared in-kernel helper: dense GIN layer + masked mean pooling on a block of
# graphs.  x: [G, N, F], adj: [G, N, N], nmask: [G, N, 1]  ->  [G, D]
# ----------------------------------------------------------------------------
def _gin_pool(x, adj, nmask, w1, b1, w2, b2, eps):
    G, N, F = x.shape
    bf16 = jnp.bfloat16
    # GIN aggregation (A + (1+eps) I) @ X, batched over graphs; bf16 MXU, f32 acc.
    agg = jnp.einsum("gnm,gmf->gnf", adj.astype(bf16), x.astype(bf16),
                     preferred_element_type=jnp.float32) + (1.0 + eps) * x
    # GIN MLP: flatten to (G*N, F) so the MXU sees a tall LHS instead of N rows.
    h = jnp.dot(agg.reshape(G * N, F).astype(bf16), w1.astype(bf16),
                preferred_element_type=jnp.float32) + b1
    h = jnp.maximum(h, 0.0)                                   # f32 VPU epilogue
    h = jnp.dot(h.astype(bf16), w2.astype(bf16),
                preferred_element_type=jnp.float32) + b2      # [G*N, D]
    # masked mean pool over nodes (f32)
    h = h.reshape(G, N, -1) * nmask
    denom = jnp.maximum(jnp.sum(nmask, axis=1), 1.0)          # [G, 1]; guard empty graphs
    return jnp.sum(h, axis=1) * pl.reciprocal(denom, approx=True)   # [G, D]


# ----------------------------------------------------------------------------
# Kernel 1: base GIN encoder, TG graphs per grid step, lane-dense [G, D] output.
# ----------------------------------------------------------------------------
def gin_pool_kernel(x_ref, adj_ref, nmask_ref, w1_ref, b1_ref, w2_ref, b2_ref,
                    out_ref, *, eps):
    out_ref[...] = _gin_pool(x_ref[...], adj_ref[...], nmask_ref[...],
                             w1_ref[...], b1_ref[...], w2_ref[...], b2_ref[...],
                             eps)


def gin_encode(x, adj, nmask, w1, b1, w2, b2, *, eps=0.0, tg=8):
    """x: [G, N, F], adj: [G, N, N], nmask: [G, N, 1] -> [G, D] pooled graph feats."""
    G, N, F = x.shape
    H = w1.shape[1]
    D = w2.shape[1]
    assert G % tg == 0 and (tg % 8 == 0 or tg == G)
    return pl.pallas_call(
        functools.partial(gin_pool_kernel, eps=eps),
        out_shape=jax.ShapeDtypeStruct((G, D), jnp.float32),
        grid_spec=pltpu.PrefetchScalarGridSpec(
            num_scalar_prefetch=0,
            grid=(G // tg,),
            in_specs=[
                pl.BlockSpec((tg, N, F), lambda g: (g, 0, 0)),
                pl.BlockSpec((tg, N, N), lambda g: (g, 0, 0)),
                pl.BlockSpec((tg, N, 1), lambda g: (g, 0, 0)),
                pl.BlockSpec((F, H), lambda g: (0, 0)),
                pl.BlockSpec((1, H), lambda g: (0, 0)),
                pl.BlockSpec((H, D), lambda g: (0, 0)),
                pl.BlockSpec((1, D), lambda g: (0, 0)),
            ],
            out_specs=pl.BlockSpec((tg, D), lambda g: (g, 0)),
        ),
        compiler_params=pltpu.CompilerParams(dimension_semantics=("parallel",)),
    )(x, adj, nmask, w1, b1, w2, b2)


# ----------------------------------------------------------------------------
# Kernel 2: fused sub-GIN + AttentionAgger.  Each grid step handles a tile of
# TB molecules; the (tiny) sub-GIN over all S substructures is recomputed per
# tile so the molecule axis stays fully parallel and sub_feat never hits HBM.
# TODO(synk): for large S, hoist sub_feat to its own call / sequential carry
# instead of the per-tile recompute.
# ----------------------------------------------------------------------------
def subgin_attn_kernel(gfeat_ref, xs_ref, adjs_ref, nmask_ref,
                       w1_ref, b1_ref, w2_ref, b2_ref,
                       wq_ref, bq_ref, wk_ref, bk_ref,
                       mask_ref, out_ref, *, eps, mdim):
    bf16 = jnp.bfloat16
    # sub-GIN over all substructures -> [S, Ds] (f32)
    sub_feat = _gin_pool(xs_ref[...], adjs_ref[...], nmask_ref[...],
                         w1_ref[...], b1_ref[...], w2_ref[...], b2_ref[...], eps)

    # AttentionAgger for this tile of molecules
    q = jnp.dot(gfeat_ref[...].astype(bf16), wq_ref[...].astype(bf16),
                preferred_element_type=jnp.float32) + bq_ref[...]        # [TB, M]
    k = jnp.dot(sub_feat.astype(bf16), wk_ref[...].astype(bf16),
                preferred_element_type=jnp.float32) + bk_ref[...]        # [S, M]
    # Q @ K^T without materializing a transpose of K: contract dim 1 of both.
    attn = lax.dot_general(q, k, (((1,), (1,)), ((), ())),
                           preferred_element_type=jnp.float32)           # [TB, S]
    attn = attn * jnp.float32(1.0 / math.sqrt(mdim))
    # masked_fill(mask, -(1 << 32)) as in MoleOOD's AttentionAgger; logits stay f32.
    attn = jnp.where(mask_ref[...] > 0.5, jnp.float32(-(1 << 32)), attn)
    attn = attn - jnp.max(attn, axis=-1, keepdims=True)
    e = jnp.exp(attn)
    p = e * pl.reciprocal(jnp.sum(e, axis=-1, keepdims=True), approx=True)
    out_ref[...] = jnp.dot(p.astype(bf16), sub_feat.astype(bf16),
                           preferred_element_type=jnp.float32)           # [TB, Ds]


def sub_gin_attention(graph_feat, xs, adjs, nmask_s,
                      w1, b1, w2, b2, wq, bq, wk, bk, mask,
                      *, mdim, eps=0.0, tb=8):
    B, Dg = graph_feat.shape
    S, Ns, F = xs.shape
    H = w1.shape[1]
    Ds = w2.shape[1]
    M = wq.shape[1]
    assert B % tb == 0 and (tb % 8 == 0 or tb == B)
    return pl.pallas_call(
        functools.partial(subgin_attn_kernel, eps=eps, mdim=mdim),
        out_shape=jax.ShapeDtypeStruct((B, Ds), jnp.float32),
        grid_spec=pltpu.PrefetchScalarGridSpec(
            num_scalar_prefetch=0,
            grid=(B // tb,),
            in_specs=[
                pl.BlockSpec((tb, Dg), lambda i: (i, 0)),
                pl.BlockSpec((S, Ns, F), lambda i: (0, 0, 0)),
                pl.BlockSpec((S, Ns, Ns), lambda i: (0, 0, 0)),
                pl.BlockSpec((S, Ns, 1), lambda i: (0, 0, 0)),
                pl.BlockSpec((F, H), lambda i: (0, 0)),
                pl.BlockSpec((1, H), lambda i: (0, 0)),
                pl.BlockSpec((H, Ds), lambda i: (0, 0)),
                pl.BlockSpec((1, Ds), lambda i: (0, 0)),
                pl.BlockSpec((Dg, M), lambda i: (0, 0)),
                pl.BlockSpec((1, M), lambda i: (0, 0)),
                pl.BlockSpec((Ds, M), lambda i: (0, 0)),
                pl.BlockSpec((1, M), lambda i: (0, 0)),
                pl.BlockSpec((tb, S), lambda i: (i, 0)),
            ],
            out_specs=pl.BlockSpec((tb, Ds), lambda i: (i, 0)),
        ),
        compiler_params=pltpu.CompilerParams(dimension_semantics=("parallel",)),
    )(graph_feat, xs, adjs, nmask_s, w1, b1, w2, b2, wq, bq, wk, bk, mask)


# ----------------------------------------------------------------------------
# Parameter / data init (deterministic, matching nn.Linear's U(-1/sqrt(fan_in), .))
# ----------------------------------------------------------------------------
def lin_init(key, fan_in, fan_out):
    bound = 1.0 / math.sqrt(fan_in)
    kw, kb = jax.random.split(key)
    # stored as [in, out] so kernels do x @ W  (== PyTorch x @ W_t.T)
    w = jax.random.uniform(kw, (fan_in, fan_out), jnp.float32, -bound, bound)
    b = jax.random.uniform(kb, (1, fan_out), jnp.float32, -bound, bound)
    return w, b


def random_adj(key, g, n, p):
    a = jax.random.uniform(key, (g, n, n)) < p
    upper = jnp.triu(a, 1)
    sym = upper | jnp.swapaxes(upper, 1, 2)
    return sym.astype(jnp.float32)


def node_mask(key, g, n, min_nodes):
    lens = jax.random.randint(key, (g,), min_nodes, n + 1)
    return (jnp.arange(n)[None, :] < lens[:, None]).astype(jnp.float32)[:, :, None]


if __name__ == "__main__":
    key = jax.random.PRNGKey(0)
    keys = jax.random.split(key, 14)

    # Small synthetic shapes consistent with get_molecule_feature.
    B, N, F = 16, 16, 16          # molecules: batch, max nodes/graph, node feature dim
    S, Ns = 32, 8                 # substructures: total count, max nodes/substructure
    H = 128                       # GIN MLP hidden dim
    BASE_DIM = SUB_DIM = 128      # backbone result dims (multiple of 128 -> lane-dense)
    MDIM = max(BASE_DIM, SUB_DIM)
    TG, TB = 8, 8                 # graphs / molecules per grid step (>=2 parallel steps)

    # dense-batched molecule graphs (padded nodes' features / edges zeroed)
    nmask = node_mask(keys[10], B, N, N // 2)
    x = jax.random.normal(keys[0], (B, N, F), jnp.float32) * nmask
    adj = random_adj(keys[1], B, N, 0.3) * nmask * jnp.swapaxes(nmask, 1, 2)

    # dense-batched substructure graphs
    nmask_s = node_mask(keys[11], S, Ns, Ns // 2)
    xs = jax.random.normal(keys[2], (S, Ns, F), jnp.float32) * nmask_s
    adjs = random_adj(keys[3], S, Ns, 0.4) * nmask_s * jnp.swapaxes(nmask_s, 1, 2)

    # base / sub GIN parameters
    w1b, b1b = lin_init(keys[4], F, H)
    w2b, b2b = lin_init(keys[5], H, BASE_DIM)
    w1s, b1s = lin_init(keys[6], F, H)
    w2s, b2s = lin_init(keys[7], H, SUB_DIM)
    # AttentionAgger parameters
    wq, bq = lin_init(keys[8], BASE_DIM, MDIM)
    wk, bk = lin_init(keys[9], SUB_DIM, MDIM)

    # membership mask: 1.0 => substructure does NOT belong to that molecule (-2^32 fill)
    sub_owner = jnp.arange(S) % B
    mask = (sub_owner[None, :] != jnp.arange(B)[:, None]).astype(jnp.float32)  # [B, S]

    graph_feat = gin_encode(x, adj, nmask, w1b, b1b, w2b, b2b, tg=TG)    # [B, BASE_DIM]
    mol_feat = sub_gin_attention(graph_feat, xs, adjs, nmask_s,
                                 w1s, b1s, w2s, b2s, wq, bq, wk, bk, mask,
                                 mdim=MDIM, tb=TB)                       # [B, SUB_DIM]

    mol_feat = jax.block_until_ready(mol_feat)
    assert mol_feat.shape == (B, SUB_DIM), mol_feat.shape
    assert bool(jnp.all(jnp.isfinite(mol_feat)))
    print("KERNEL_OK")
</pallas_src>

<mosaic_0001>
module attributes {stable_mosaic.version = 11 : i64} {
  func.func @gin_pool_kernel(%arg0: i32, %arg1: memref<8x16x16xf32, #tpu.memory_space<vmem>>, %arg2: memref<8x16x16xf32, #tpu.memory_space<vmem>>, %arg3: memref<8x16x1xf32, #tpu.memory_space<vmem>>, %arg4: memref<16x128xf32, #tpu.memory_space<vmem>>, %arg5: memref<1x128xf32, #tpu.memory_space<vmem>>, %arg6: memref<128x128xf32, #tpu.memory_space<vmem>>, %arg7: memref<1x128xf32, #tpu.memory_space<vmem>>, %arg8: memref<8x128xf32, #tpu.memory_space<vmem>>) attributes {dimension_semantics = [#tpu.dimension_semantics<parallel>], iteration_bounds = array<i64: 2>, scalar_prefetch = 0 : i64, scratch_operands = 0 : i64, tpu.core_type = #tpu.core_type<tc>, window_params = [{transform_indices = @transform_0, window_bounds = array<i64: 8, 16, 16>}, {transform_indices = @transform_1, window_bounds = array<i64: 8, 16, 16>}, {transform_indices = @transform_2, window_bounds = array<i64: 8, 16, 1>}, {pipeline_mode = #tpu.pipeline_mode<synchronous>, transform_indices = @transform_3, window_bounds = array<i64: 16, 128>}, {pipeline_mode = #tpu.pipeline_mode<synchronous>, transform_indices = @transform_4, window_bounds = array<i64: 1, 128>}, {pipeline_mode = #tpu.pipeline_mode<synchronous>, transform_indices = @transform_5, window_bounds = array<i64: 128, 128>}, {pipeline_mode = #tpu.pipeline_mode<synchronous>, transform_indices = @transform_6, window_bounds = array<i64: 1, 128>}, {transform_indices = @transform_7, window_bounds = array<i64: 8, 128>}]} {
    %c0 = arith.constant 0 : index
    %c0_0 = arith.constant 0 : index
    %c0_1 = arith.constant 0 : index
    %0 = vector.load %arg1[%c0, %c0_0, %c0_1] : memref<8x16x16xf32, #tpu.memory_space<vmem>>, vector<8x16x16xf32>
    %c0_2 = arith.constant 0 : index
    %c0_3 = arith.constant 0 : index
    %c0_4 = arith.constant 0 : index
    %1 = vector.load %arg2[%c0_2, %c0_3, %c0_4] : memref<8x16x16xf32, #tpu.memory_space<vmem>>, vector<8x16x16xf32>
    %c0_5 = arith.constant 0 : index
    %c0_6 = arith.constant 0 : index
    %c0_7 = arith.constant 0 : index
    %2 = vector.load %arg3[%c0_5, %c0_6, %c0_7] : memref<8x16x1xf32, #tpu.memory_space<vmem>>, vector<8x16x1xf32>
    %c0_8 = arith.constant 0 : index
    %c0_9 = arith.constant 0 : index
    %3 = vector.load %arg4[%c0_8, %c0_9] : memref<16x128xf32, #tpu.memory_space<vmem>>, vector<16x128xf32>
    %c0_10 = arith.constant 0 : index
    %c0_11 = arith.constant 0 : index
    %4 = vector.load %arg5[%c0_10, %c0_11] : memref<1x128xf32, #tpu.memory_space<vmem>>, vector<1x128xf32>
    %c0_12 = arith.constant 0 : index
    %c0_13 = arith.constant 0 : index
    %5 = vector.load %arg6[%c0_12, %c0_13] : memref<128x128xf32, #tpu.memory_space<vmem>>, vector<128x128xf32>
    %c0_14 = arith.constant 0 : index
    %c0_15 = arith.constant 0 : index
    %6 = vector.load %arg7[%c0_14, %c0_15] : memref<1x128xf32, #tpu.memory_space<vmem>>, vector<1x128xf32>
    %7 = arith.truncf %1 : vector<8x16x16xf32> to vector<8x16x16xbf16>
    %8 = arith.truncf %0 : vector<8x16x16xf32> to vector<8x16x16xbf16>
    "tpu.trace_start"() <{level = 10 : i32, message = "gnm,gmf->gnf"}> : () -> ()
    %cst = arith.constant dense<0.000000e+00> : vector<8x16x16xf32>
    %9 = tpu.matmul %7, %8, %cst {dimension_numbers = #tpu.dot_dimension_numbers<[2], [1], [1], [2], [0, 0, 0, 1, 1, 2], [0], [0]>} : vector<8x16x16xbf16>, vector<8x16x16xbf16>, vector<8x16x16xf32> -> vector<8x16x16xf32>
    "tpu.trace_stop"() : () -> ()
    %cst_16 = arith.constant 1.000000e+00 : f32
    %10 = vector.broadcast %cst_16 : f32 to vector<8x16x16xf32>
    %11 = arith.mulf %10, %0 : vector<8x16x16xf32>
    %12 = arith.addf %9, %11 : vector<8x16x16xf32>
    %13 = vector.shape_cast %12 : vector<8x16x16xf32> to vector<128x16xf32>
    %14 = arith.truncf %13 : vector<128x16xf32> to vector<128x16xbf16>
    %15 = arith.truncf %3 : vector<16x128xf32> to vector<16x128xbf16>
    %cst_17 = arith.constant dense<0.000000e+00> : vector<128x128xf32>
    %16 = tpu.matmul %14, %15, %cst_17 {dimension_numbers = #tpu.dot_dimension_numbers<[1], [0], [0], [1], [0, 0, 1, 1], [], []>} : vector<128x16xbf16>, vector<16x128xbf16>, vector<128x128xf32> -> vector<128x128xf32>
    %17 = vector.broadcast %4 : vector<1x128xf32> to vector<128x128xf32>
    %18 = arith.addf %16, %17 : vector<128x128xf32>
    %cst_18 = arith.constant 0.000000e+00 : f32
    %19 = vector.broadcast %cst_18 : f32 to vector<128x128xf32>
    %20 = arith.maximumf %18, %19 : vector<128x128xf32>
    %21 = arith.truncf %20 : vector<128x128xf32> to vector<128x128xbf16>
    %22 = arith.truncf %5 : vector<128x128xf32> to vector<128x128xbf16>
    %cst_19 = arith.constant dense<0.000000e+00> : vector<128x128xf32>
    %23 = tpu.matmul %21, %22, %cst_19 {dimension_numbers = #tpu.dot_dimension_numbers<[1], [0], [0], [1], [0, 0, 1, 1], [], []>} : vector<128x128xbf16>, vector<128x128xbf16>, vector<128x128xf32> -> vector<128x128xf32>
    %24 = vector.broadcast %6 : vector<1x128xf32> to vector<128x128xf32>
    %25 = arith.addf %23, %24 : vector<128x128xf32>
    %26 = vector.shape_cast %25 : vector<128x128xf32> to vector<8x16x128xf32>
    %27 = vector.broadcast %2 : vector<8x16x1xf32> to vector<8x16x128xf32>
    %28 = arith.mulf %26, %27 : vector<8x16x128xf32>
    %cst_20 = arith.constant dense<0.000000e+00> : vector<8x1xf32>
    %29 = vector.multi_reduction <add>, %2, %cst_20 [1] : vector<8x16x1xf32> to vector<8x1xf32>
    %cst_21 = arith.constant 1.000000e+00 : f32
    %30 = vector.broadcast %cst_21 : f32 to vector<8x1xf32>
    %31 = arith.maximumf %29, %30 : vector<8x1xf32>
    %cst_22 = arith.constant dense<0.000000e+00> : vector<8x128xf32>
    %32 = vector.multi_reduction <add>, %28, %cst_22 [1] : vector<8x16x128xf32> to vector<8x128xf32>
    %33 = tpu.reciprocal %31 {approx = true} : vector<8x1xf32> -> vector<8x1xf32>
    %34 = vector.broadcast %33 : vector<8x1xf32> to vector<8x128xf32>
    %35 = arith.mulf %32, %34 : vector<8x128xf32>
    %c0_23 = arith.constant 0 : index
    %c0_24 = arith.constant 0 : index
    %36 = vector.load %arg8[%c0_23, %c0_24] : memref<8x128xf32, #tpu.memory_space<vmem>>, vector<8x128xf32>
    tpu.vector_store %arg8[%c0_23, %c0_24], %35 {strides = array<i32>} : memref<8x128xf32, #tpu.memory_space<vmem>>, vector<8x128xf32>,
    return
  }
  func.func @transform_0(%arg0: i32) -> (i32, i32, i32) {
    %c0_i32 = arith.constant 0 : i32
    %c0_i32_0 = arith.constant 0 : i32
    %c0_i32_1 = arith.constant 0 : i32
    return %arg0, %c0_i32, %c0_i32_0 : i32, i32, i32
  }
  func.func @transform_1(%arg0: i32) -> (i32, i32, i32) {
    %c0_i32 = arith.constant 0 : i32
    %c0_i32_0 = arith.constant 0 : i32
    %c0_i32_1 = arith.constant 0 : i32
    return %arg0, %c0_i32, %c0_i32_0 : i32, i32, i32
  }
  func.func @transform_2(%arg0: i32) -> (i32, i32, i32) {
    %c0_i32 = arith.constant 0 : i32
    %c0_i32_0 = arith.constant 0 : i32
    %c0_i32_1 = arith.constant 0 : i32
    return %arg0, %c0_i32, %c0_i32_0 : i32, i32, i32
  }
  func.func @transform_3(%arg0: i32) -> (i32, i32) {
    %c0_i32 = arith.constant 0 : i32
    %c0_i32_0 = arith.constant 0 : i32
    %c0_i32_1 = arith.constant 0 : i32
    return %c0_i32, %c0_i32_0 : i32, i32
  }
  func.func @transform_4(%arg0: i32) -> (i32, i32) {
    %c0_i32 = arith.constant 0 : i32
    %c0_i32_0 = arith.constant 0 : i32
    %c0_i32_1 = arith.constant 0 : i32
    return %c0_i32, %c0_i32_0 : i32, i32
  }
  func.func @transform_5(%arg0: i32) -> (i32, i32) {
    %c0_i32 = arith.constant 0 : i32
    %c0_i32_0 = arith.constant 0 : i32
    %c0_i32_1 = arith.constant 0 : i32
    return %c0_i32, %c0_i32_0 : i32, i32
  }
  func.func @transform_6(%arg0: i32) -> (i32, i32) {
    %c0_i32 = arith.constant 0 : i32
    %c0_i32_0 = arith.constant 0 : i32
    %c0_i32_1 = arith.constant 0 : i32
    return %c0_i32, %c0_i32_0 : i32, i32
  }
  func.func @transform_7(%arg0: i32) -> (i32, i32) {
    %c0_i32 = arith.constant 0 : i32
    %c0_i32_0 = arith.constant 0 : i32
    return %arg0, %c0_i32 : i32, i32
  }
}

</mosaic_0001>

<bundles_post_ra>
// kernel: tpu_custom_call.1
= control target key start
LH: loop header
LB: loop body
LE: loop exit
PB: predicated region body
PF: predicated region fallthrough
CT: control target
= control target key end

     0   :  { %s1985_s0 = inlined_call_operand.vmem [shape: f32[16,16,16], index: 0, kind: input, shape index: {}]   ;;  %s1986_s1 = inlined_call_operand.hbm [shape: f32[16,16,16], index: 1, kind: input, shape index: {}]   ;;  %s1987_s2 = inlined_call_operand.vmem [shape: f32[16,16,1], index: 2, kind: input, shape index: {}]   ;;  %s1988_s3 = inlined_call_operand.vmem [shape: f32[16,128], index: 3, kind: input, shape index: {}]   ;;  %s1989_s4 = inlined_call_operand.vmem [shape: f32[1,128], index: 4, kind: input, shape index: {}]   ;;  %s1990_s5 = inlined_call_operand.hbm [shape: f32[128,128], index: 5, kind: input, shape index: {}]   ;;  %s1991_s6 = inlined_call_operand.vmem [shape: f32[1,128], index: 6, kind: input, shape index: {}]   ;;  %s1992_s7 = inlined_call_operand.hbm [shape: f32[16,128], index: 7, kind: output, shape index: {}]  }
   0x1   :  { %1995 = sst [smem:[#allocation11_spill]] %s1990_s5 }
   0x2   :  { %12 = vsyncpa [#allocation3], 0 }
   0x3   :  { %14 = vsyncpa [#allocation3 + $0x1], 0 }
   0x4   :  { %15 = vsyncpa [#allocation6], 0 }
   0x5   :  { %16 = vsyncpa [#allocation4], 0 }
   0x6   :  { %18 = vsyncpa [#allocation4 + $0x1], 0  ;;  %s1604_s24 = smov 0   ;;  %s1606_s25 = smov 0  }
   0x7   :  { %s1608_s26 = smov 0   ;;  %s1610_s27 = smov 0  }
   0x8 LB: > { %s1625_s28 = sadd.s32 4294967295, %s1558_s27   ;;  %s1296_s29 = sadd.s32 4294967294, %s1558_s27   ;;  %s1558_s27 = sphi %s1610_s27, %s2008_s27   ;;  %s1554_s26 = sphi %s1608_s26, %s2007_s26   ;;  %s1550_s25 = sphi %s1606_s25, %s2006_s25   ;;  %s1546_s24 = sphi %s1604_s24, %s2005_s24  }
   0x9   : > { %p70_p0 = scmp.ne.s32.totalorder %s1550_s25, %s1546_s24  ;;  %p71_p1 = scmp.eq.s32.totalorder %s1625_s28, 0 }
   0xa   : > { %p204_p2 = scmp.eq.s32.totalorder %s1625_s28, 1  ;;  %p210_p3 = scmp.eq.s32.totalorder %s1296_s29, 1 }
   0xb   : > { %p1634_p4 = por %p71_p1, %p70_p0  ;;  %p1297_p5 = scmp.ge.s32.totalorder %s1558_s27, 1 }
   0xc   : > { %p1639_p6 = por %p210_p3, %p70_p0  ;;  %p217_p7 = scmp.lt.s32.totalorder %s1558_s27, 3 }
   0xd   : > { %s1998_s5 = sld [smem:[#allocation11_spill]]  ;;  %s1560_s13 = smov [#allocation5]  }
   0xe   : > { %p1647_p8 = pnand %p1297_p5, %p217_p7  ;;  %s236_s14 = sshll.u32 %s1560_s13, 4  ;;  %s237_s14 = int_to_ptr.vmem [resolvable:$true] %s236_s14 }
   0xf   : > { %s1657_s15 = sadd.s32 1, %s1558_s27   ;;  %s1993_s16 = smov 128  }
  0x10   : > { %p1355_p9 = pneg %p1647_p8  ;;  %s1994_s17 = smov 8  }
  0x11   : > { %s54_s18 = ssub.s32 %s1558_s27, %s1657_s15  ;;  %s57_s19 = sadd.s32 1, %s1554_s26 }
  0x12   : > { %p1356_p10 = pnand %p1355_p9, %p71_p1  ;;  %p55_p12 = scmp.eq.s32.totalorder %s54_s18, 0 }
  0x13   : > { %s234_s11 = sshll.u32 %s1998_s5, 4  ;;  %p64_p13 = scmp.ne.s32.totalorder %s1554_s26, %s1550_s25  ;;  %s235_s11 = int_to_ptr.hbm [resolvable:$true] %s234_s11 }
  0x14   : > { %1358 = dma.hbm_to_vmem [thread:$0]  (!%p1356_p10), %s235_s11, 2048, %s237_s14, [#allocation6], %s1993_s16, %s1993_s16, %s1994_s17  }
  0x15   : > { %p65_p0 = scmp.eq.s32.totalorder %s1558_s27, 0  ;;  %p1673_p3 = por %p204_p2, %p64_p13 }
  0x16   : > { %s1669_s20 = scalar_select %p55_p12, %s1554_s26, %s57_s19  }
  0x17   : > { %p1368_p5 = scmp.lt.s32.totalorder %s1558_s27, 2  ;;  %s263_s22 = sand.u32 1, %s1554_s26  }
  0x18   : > { %s1335_s23 = sshll.u32 %s1558_s27, 7  ;;  %p66_p7 = por %p65_p0, %p64_p13 }
  0x19   : > { %s1300_s29 = sshll.u32 %s263_s22, 7  ;;  %s273_s11 = scalar_lea.hbm %s1986_s1, %s1335_s23 }
  0x1a   : > { %s274_s13 = sshll.u32 %s273_s11, 4  ;;  %s267_s14 = scalar_lea.vmem [#allocation2], %s1300_s29  ;;  %s275_s13 = int_to_ptr.hbm [resolvable:$true] %s274_s13 }
  0x1b   : > { %s276_s18 = sshll.u32 %s267_s14, 4  ;;  %p1683_p9 = pnand %p1368_p5, %p66_p7  ;;  %s277_s18 = int_to_ptr.vmem [resolvable:$true] %s276_s18 }
  0x1c   : > { %s264_s16 = scalar_lea.sflag [#allocation3], %s263_s22  ;;  %s1458_s17 = sshra.s32 %s275_s13, 4  ;;  %s1459_s17 = int_to_ptr.hbm [resolvable:$true] %s1458_s17 }
  0x1d   : > { %s1460_s5 = scalar_lea.hbm %s1459_s17, 128  ;;  %p1462_p10 = pneg %p1683_p9 }
  0x1e   : > { %p1461_p2 = scmp.ne.s32.totalorder %s1459_s17, %s1460_s5  ;;  %s1465_s29 = scalar_lea.hbm %s1986_s1, 256 }
  0x1f   : > { %p1466_p0 = scmp.lt.s32.totalorder %s1459_s17, %s1986_s1  ;;  %p1467_p5 = scmp.lt.s32.totalorder %s1465_s29, %s1460_s5 }
  0x20   : > { %p1463_p12 = pnand %p1462_p10, %p1461_p2 }
  0x21   : > { %p1468_p7 = por %p1467_p5, %p1466_p0 }
  0x22   : > { %p1464_p13 = pneg %p1463_p12 }
  0x24   : > { %p1469_p11 = pnand %p1468_p7, %p1464_p13 }
  0x26   : > { %1472 = shalt.err (!%p1469_p11)
}
  0x27   : > { %s2002_s22 = smov 8   ;;  %s2003_s14 = smov 128  }
  0x28   : > { %1362 = dma.hbm_to_vmem [thread:$0]  (!%p1683_p9), %s275_s13, 2048, %s277_s18, %s264_s16, %s2003_s14, %s2003_s14, %s2002_s22  }
  0x29   : > { %298 = sbr.rel (%p1647_p8) target bundleno = 626 (0x272), region = 48  ;;  %s1703_s23 = sand.u32 (!%p1647_p8), 1, %s1550_s25  }
  0x2a   : > { %s1305_s17 = sshll.u32 (!%p1647_p8), %s1703_s23, 7  ;;  %s301_s5 = scalar_lea.sflag (!%p1647_p8), [#allocation3], %s1703_s23 }
  0x2b   : > { %s1707_s9 = scalar_lea.vmem (!%p1647_p8), [#allocation2], %s1305_s17 }
  0x2e   : > { %1533 = dma.done.wait (%p1634_p4), %s301_s5, 2048  }
  0x2f   : > { %1535 = vsyncadd (%p1634_p4), %s301_s5, 4294965248 }
  0x30   : > { %1537 = dma.done.wait (%p71_p1), [#allocation6], 2048  }
  0x31   : > { %1539 = vsyncadd (%p71_p1), [#allocation6], 4294965248  ;;  %s1718_s12 = sshll.u32 %s1625_s28, 3  ;;  %v385_v2 = vld [vmem:[%s1707_s9] sm:$0xff]  ;;  %v386_v5 = vld [vmem:[%s1707_s9 + $0x8] sm:$0xff]  ;;  %vm480_vm0 = vcmask 130048  }
  0x32   : > { %p354_p8 = scmp.lt.s32.totalorder %s1718_s12, 15  ;;  %v437_v6 = vpack.c.bf16 %v385_v2, %v385_v2  ;;  %v438_v9 = vpack.c.bf16 %v386_v5, %v386_v5  ;;  %v387_v12 = vld [vmem:[%s1707_s9 + $0x10] sm:$0xff]  ;;  %v388_v13 = vld [vmem:[%s1707_s9 + $0x18] sm:$0xff]  ;;  %v389_v20 = vld [vmem:[%s1707_s9 + $0x20] sm:$0xff]  ;;  %vm959_vm1 = vcmask 7168   ;;  %s1307_s13 = sshll.u32 %s1703_s23, 3 }
  0x33   : > { %v439_v18 = vpack.c.bf16 %v387_v12, %v387_v12  ;;  %v440_v24 = vpack.c.bf16 %v388_v13, %v388_v13  ;;  %v390_v25 = vld [vmem:[%s1707_s9 + $0x28] sm:$0xff]  ;;  %v441_v35 = vpack.c.bf16 %v389_v20, %v389_v20  ;;  %v391_v40 = vld [vmem:[%s1707_s9 + $0x30] sm:$0xff]  ;;  %v393_v51 = vld [vmem:[%s1707_s9 + $0x40] sm:$0xff]  ;;  %vm1160_vm2 = vcmask 1041409   ;;  %s1187_s28 = scalar_lea.hbm %s1992_s7, %s1718_s12  ;;  %s352_s29 = scalar_lea.vmem [#allocation7], %s1307_s13 }
  0x34   : > { %s1722_s16 = scalar_select %p354_p8, %s1718_s12, 15  ;;  %v471_v17 = vunpack.c.l.b16 %v437_v6  ;;  %v472_v21 = vunpack.c.l.b16 %v438_v9  ;;  %v442_v38 = vpack.c.bf16 %v390_v25, %v390_v25  ;;  %v392_v53 = vld [vmem:[%s1707_s9 + $0x38] sm:$0xff]  ;;  %v443_v54 = vpack.c.bf16 %v391_v40, %v391_v40  ;;  %v394_v57 = vld [vmem:[%s1707_s9 + $0x48] sm:$0xff]  ;;  %v395_v58 = vld [vmem:[%s1707_s9 + $0x50] sm:$0xff] }
  0x35   : > { %v500_v28 = vunpack.c.l.b16 %v439_v18  ;;  %v501_v34 = vunpack.c.l.b16 %v440_v24  ;;  %v528_v44 = vunpack.c.l.b16 %v441_v35  ;;  %v396_v62 = vld [vmem:[%s1707_s9 + $0x58] sm:$0xff]  ;;  %v444_v9 = vpack.c.bf16 %v392_v53, %v392_v53  ;;  %v397_v24 = vld [vmem:[%s1707_s9 + $0x60] sm:$0xff]  ;;  %v398_v25 = vld [vmem:[%s1707_s9 + $0x68] sm:$0xff]  ;;  %s1189_s10 = sshll.u32 %s352_s29, 4  ;;  %s1191_s11 = sshll.u32 %s1187_s28, 4  ;;  %s1190_s10 = int_to_ptr.vmem [resolvable:$true] %s1189_s10  ;;  %s1192_s11 = int_to_ptr.hbm [resolvable:$true] %s1191_s11 }
  0x36   : > { %s1336_s30 = sshll.u32 %s1722_s16, 4  ;;  %v473_v32 = vpack.c.b16 %v472_v21, %v471_v17  ;;  %v529_v49 = vunpack.c.l.b16 %v442_v38  ;;  %v446_v12 = vpack.c.bf16 %v394_v57, %v394_v57  ;;  %v448_v17 = vpack.c.bf16 %v396_v62, %v396_v62  ;;  %v418_v35 = vld [vmem:[%s1988_s3 + $0x8] sm:$0xff]  ;;  %v400_v57 = vld [vmem:[%s1707_s9 + $0x78] sm:$0xff]  ;;  %s1177_s12 = scalar_lea.sflag [#allocation4], %s1703_s23 }
  0x37   : > { %s1730_s19 = scalar_lea.vmem %s1985_s0, %s1336_s30  ;;  %v502_v43 = vpack.c.b16 %v501_v34, %v500_v28  ;;  %v556_v28 = vunpack.c.l.b16 %v443_v54  ;;  %v417_v34 = vld [vmem:[%s1988_s3] sm:$0xff]  ;;  %v450_v38 = vpack.c.bf16 %v398_v25, %v398_v25  ;;  %s1871_s17 = scalar_lea.vmem %s1987_s2, %s1336_s30  ;;  %vm1162_vm3 = vcmask 1042434  }
  0x38   : > { %v1733_v0 = vld [vmem:[%s1730_s19] sm:$0xff]  ;;  %v1736_v1 = vld [vmem:[%s1730_s19 + $0x8] sm:$0xff]  ;;  %v1745_v7 = vld [vmem:[%s1730_s19 + $0x10] sm:$0xff]  ;;  %v530_v59 = vpack.c.b16 %v529_v49, %v528_v44  ;;  %v585_v21 = vunpack.c.l.b16 %v446_v12  ;;  %v702_v49 = vpack.c.bf16 %v418_v35, %v417_v34  ;;  %vm1164_vm4 = vcmask 1043459   ;;  %s1502_s22 = sshra.s32 %s1192_s11, 4  ;;  %s1503_s22 = int_to_ptr.hbm [resolvable:$true] %s1502_s22 }
  0x39   : > { %v453_v3 = vpack.c.bf16 %v1733_v0, %v1733_v0  ;;  %v454_v4 = vpack.c.bf16 %v1736_v1, %v1736_v1  ;;  %v1748_v8 = vld [vmem:[%s1730_s19 + $0x18] sm:$0xff]  ;;  %v455_v10 = vpack.c.bf16 %v1745_v7, %v1745_v7  ;;  %v1757_v14 = vld [vmem:[%s1730_s19 + $0x20] sm:$0xff]  ;;  %v1760_v19 = vld [vmem:[%s1730_s19 + $0x28] sm:$0xff]  ;;  %vm1166_vm5 = vcmask 1044484   ;;  %s1504_s14 = scalar_lea.hbm %s1503_s22, 8  ;;  %p1509_p9 = scmp.lt.s32.totalorder %s1503_s22, %s1992_s7 }
  0x3a   : > { %v456_v11 = vpack.c.bf16 %v1748_v8, %v1748_v8  ;;  %v1765_v26 = vld [vmem:[%s1730_s19 + $0x30] sm:$0xff]  ;;  %v457_v29 = vpack.c.bf16 %v1757_v14, %v1757_v14  ;;  %v458_v30 = vpack.c.bf16 %v1760_v19, %v1760_v19  ;;  %v1772_v31 = vld [vmem:[%s1730_s19 + $0x38] sm:$0xff]  ;;  %v1778_v41 = vld [vmem:[%s1730_s19 + $0x40] sm:$0xff]  ;;  %vm1168_vm6 = vcmask 1045509   ;;  %p1505_p1 = scmp.ne.s32.totalorder %s1503_s22, %s1504_s14 }
  0x3b   : > { %v476_v15 = vunpack.c.l.b16 %v453_v3  ;;  %v477_v16 = vunpack.c.l.b16 %v454_v4  ;;  %v505_v22 = vunpack.c.l.b16 %v455_v10  ;;  %v459_v39 = vpack.c.bf16 %v1765_v26, %v1765_v26  ;;  %v1781_v42 = vld [vmem:[%s1730_s19 + $0x48] sm:$0xff]  ;;  %v1786_v46 = vld [vmem:[%s1730_s19 + $0x50] sm:$0xff]  ;;  %v1789_v47 = vld [vmem:[%s1730_s19 + $0x58] sm:$0xff] }
  0x3c   : > { %v506_v23 = vunpack.c.l.b16 %v456_v11  ;;  %v533_v36 = vunpack.c.l.b16 %v457_v29  ;;  %v534_v37 = vunpack.c.l.b16 %v458_v30  ;;  %v460_v45 = vpack.c.bf16 %v1772_v31, %v1772_v31  ;;  %v1807_v5 = vld [vmem:[%s1730_s19 + $0x60] sm:$0xff]  ;;  %v1810_v6 = vld [vmem:[%s1730_s19 + $0x68] sm:$0xff]  ;;  %v1814_v18 = vld [vmem:[%s1730_s19 + $0x70] sm:$0xff]  ;;  %p1506_p4 = pnand %p1505_p1, %p1673_p3 }
  0x3d   : > { %v478_v27 = vpack.c.b16 %v477_v16, %v476_v15  ;;  %v561_v50 = vunpack.c.l.b16 %v459_v39  ;;  %v461_v55 = vpack.c.bf16 %v1778_v41, %v1778_v41  ;;  %v462_v56 = vpack.c.bf16 %v1781_v42, %v1781_v42  ;;  %v432_v34 = vld [vmem:[#allocation5 + $0x60] sm:$0xff] }
  0x3e   : > { %v507_v33 = vpack.c.b16 %v506_v23, %v505_v22  ;;  %v535_v48 = vpack.c.b16 %v534_v37, %v533_v36  ;;  %v562_v52 = vunpack.c.l.b16 %v460_v45  ;;  %v463_v60 = vpack.c.bf16 %v1786_v46, %v1786_v46  ;;  %p1507_p11 = pneg %p1506_p4 }
  0x3f   : > { %491 = vmatpush.bf16.msra.mxu3 %v478_v27  ;;  %v464_v61 = vpack.c.bf16 %v1789_v47, %v1789_v47  ;;  %v589_v2 = vunpack.c.l.b16 %v461_v55  ;;  %v590_v3 = vunpack.c.l.b16 %v462_v56  ;;  %v445_v4 = vpack.c.bf16 %v393_v51, %v393_v51  ;;  %v1823_v27 = vld [vmem:[%s1730_s19 + $0x78] sm:$0xff]  ;;  %v399_v56 = vld [vmem:[%s1707_s9 + $0x70] sm:$0xff]  ;;  %s1508_s9 = scalar_lea.hbm %s1992_s7, 16 }
  0x40   : > { %519 = vmatpush.bf16.msra.mxu1 %v507_v33  ;;  %547 = vmatpush.bf16.msra.mxu2 %v535_v48  ;;  %v563_v63 = vpack.c.b16 %v562_v52, %v561_v50  ;;  %v617_v10 = vunpack.c.l.b16 %v463_v60  ;;  %v447_v16 = vpack.c.bf16 %v395_v58, %v395_v58  ;;  %v465_v22 = vpack.c.bf16 %v1807_v5, %v1807_v5  ;;  %p1510_p2 = scmp.lt.s32.totalorder %s1508_s9, %s1504_s14 }
  0x41   : > { %v618_v11 = vunpack.c.l.b16 %v464_v61  ;;  %v591_v13 = vpack.c.b16 %v590_v3, %v589_v2  ;;  %v584_v15 = vunpack.c.l.b16 %v445_v4  ;;  %v466_v23 = vpack.c.bf16 %v1810_v6, %v1810_v6 }
  0x42   : > { %1314 = vmatmul.msk.bf16.vlgmr.msra.gmra.mxu3 %vm480_vm0, %v473_v32  ;;  %v645_v30 = vunpack.c.l.b16 %v465_v22  ;;  %v467_v33 = vpack.c.bf16 %v1814_v18, %v1814_v18  ;;  %v557_v36 = vunpack.c.l.b16 %v444_v9  ;;  %v449_v37 = vpack.c.bf16 %v397_v24, %v397_v24  ;;  %p1511_p10 = por %p1510_p2, %p1509_p9 }
  0x43   : > { %1315 = vmatmul.msk.bf16.vlgmr.msra.gmra.mxu1 %vm480_vm0, %v502_v43  ;;  %1316 = vmatmul.msk.bf16.vlgmr.msra.gmra.mxu2 %vm480_vm0, %v530_v59  ;;  %v619_v20 = vpack.c.b16 %v618_v11, %v617_v10  ;;  %v586_v29 = vpack.c.b16 %v585_v21, %v584_v15  ;;  %v646_v32 = vunpack.c.l.b16 %v466_v23  ;;  %v468_v39 = vpack.c.bf16 %v1823_v27, %v1823_v27 }
  0x44   : > { %575 = vmatpush.bf16.msrb.mxu3 %v563_v63  ;;  %603 = vmatpush.bf16.msra.mxu0 %v591_v13  ;;  %v612_v40 = vunpack.c.l.b16 %v447_v16  ;;  %v613_v43 = vunpack.c.l.b16 %v448_v17  ;;  %v673_v45 = vunpack.c.l.b16 %v467_v33  ;;  %v558_v50 = vpack.c.b16 %v557_v36, %v556_v28  ;;  %v435_v33 = vld [vmem:[#allocation5 + $0x78] sm:$0xff]  ;;  %v433_v36 = vld [vmem:[#allocation5 + $0x68] sm:$0xff]  ;;  %p1512_p12 = pnand %p1511_p10, %p1507_p11 }
  0x45   : > { %631 = vmatpush.bf16.msrb.mxu1 %v619_v20  ;;  %v647_v44 = vpack.c.b16 %v646_v32, %v645_v30  ;;  %v674_v48 = vunpack.c.l.b16 %v468_v39  ;;  %v640_v51 = vunpack.c.l.b16 %v449_v37  ;;  %v641_v52 = vunpack.c.l.b16 %v450_v38  ;;  %v434_v32 = vld [vmem:[#allocation5 + $0x70] sm:$0xff]  ;;  %v428_v39 = vld [vmem:[#allocation5 + $0x40] sm:$0xff] }
  0x46   : > { %v614_v54 = vpack.c.b16 %v613_v43, %v612_v40  ;;  %v451_v58 = vpack.c.bf16 %v399_v56, %v399_v56  ;;  %v452_v59 = vpack.c.bf16 %v400_v57, %v400_v57  ;;  %v810_v35 = vpack.c.bf16 %v435_v33, %v434_v32  ;;  %v429_v40 = vld [vmem:[#allocation5 + $0x48] sm:$0xff]  ;;  %v424_v56 = vld [vmem:[#allocation5 + $0x20] sm:$0xff] }
  0x47   : > { %1318 = vmatmul.msk.bf16.vlgmr.msra.gmra.mxu0 %vm480_vm0, %v586_v29  ;;  %659 = vmatpush.bf16.msrb.mxu2 %v647_v44  ;;  %v675_v53 = vpack.c.b16 %v674_v48, %v673_v45  ;;  %v642_v55 = vpack.c.b16 %v641_v52, %v640_v51  ;;  %v809_v38 = vpack.c.bf16 %v433_v36, %v432_v34  ;;  %v425_v57 = vld [vmem:[#allocation5 + $0x28] sm:$0xff]  ;;  %vm1170_vm7 = vcmask 1046534  }
  0x48   : > { %737 = vmatpush.bf16.msrb.mxu0 %v702_v49  ;;  %v668_v60 = vunpack.c.l.b16 %v451_v58  ;;  %v669_v61 = vunpack.c.l.b16 %v452_v59  ;;  %v807_v45 = vpack.c.bf16 %v429_v40, %v428_v39  ;;  %v805_v58 = vpack.c.bf16 %v425_v57, %v424_v56  ;;  %v422_v59 = vld [vmem:[#allocation5 + $0x10] sm:$0xff] }
  0x49   : > { %687 = vmatpush.bf16.msra.mxu3 %v675_v53  ;;  %814 = vmatpush.bf16.msra.mxu1 %v810_v35  ;;  %vm1172_vm8 = vcmask 1047559  }
  0x4a   : > { %v670_v62 = vpack.c.b16 %v669_v61, %v668_v60  ;;  %v423_v60 = vld [vmem:[#allocation5 + $0x18] sm:$0xff] }
  0x4b   : > { %1339 = vmatpush.bf16.msra.mxu2 %v810_v35  ;;  %v804_v61 = vpack.c.bf16 %v423_v60, %v422_v59 }
  0x4d   : > { %815 = vmatpush.bf16.msra.mxu1 %v809_v38 }
  0x4f   : > { %1340 = vmatpush.bf16.msra.mxu2 %v809_v38  ;;  %v407_v38 = vld [vmem:[%s1871_s17 + $0x30] sm:$0xff] }
  0x52   : > { %1317 = vmatmul.msk.bf16.vlgmr.msrb.gmra.mxu3 %vm480_vm0, %v558_v50 }
  0x53   : > { %1319 = vmatmul.msk.bf16.vlgmr.msrb.gmra.mxu1 %vm480_vm0, %v614_v54  ;;  %1338 = vmatpush.bf16.msrb.mxu3 %v702_v49 }
  0x54   : > { %1320 = vmatmul.msk.bf16.vlgmr.msrb.gmra.mxu2 %vm480_vm0, %v642_v55  ;;  %v427_v55 = vld [vmem:[#allocation5 + $0x38] sm:$0xff] }
  0x62   : > { %1321 = vmatmul.msk.bf16.vlgmr.msra.gmra.mxu3 %vm480_vm0, %v670_v62 }
  0xc0   : > { %v521_v2 = vpop.f32.mrf.mxu1 }
  0xc1   : > { %v522_v15 = vadd.f32 %v521_v2, %v1745_v7  ;;  %v403_v2 = vld [vmem:[%s1871_s17 + $0x10] sm:$0xff] }
  0xc2   : > { %v969_v32 = vsel %vm959_vm1, %v403_v2, 0.0 }
  0xc4   : > { %v605_v48 = vpop.f32.mrf.mxu0 }
  0xc5   : > { %v493_v63 = vpop.f32.mrf.mxu3 }
  0xc6   : > { %v494_v4 = vadd.f32 %v493_v63, %v1733_v0  ;;  %v549_v12 = vpop.f32.mrf.mxu2  ;;  %v1563_v63 = vmov 0  }
  0xc7   : > { %v550_v28 = vadd.f32 %v549_v12, %v1757_v14  ;;  %v430_v14 = vld [vmem:[#allocation5 + $0x50] sm:$0xff]  ;;  %1408 = vset.pattern.permute.xlu1 %v1563_v63  ;;  %1407 = vset.pattern.permute.xlu0 %v1563_v63 }
  0xc8   : > { %v523_v11 = vpop.f32.mrf.mxu1  ;;  %875 = vperm.xlu1 %1408, %v403_v2   ;;  %1409 = vset.pattern.permute.xlu2 %v1563_v63  ;;  %v409_v63 = vld [vmem:[%s1871_s17 + $0x40] sm:$0xff] }
  0xc9   : > { %v524_v16 = vadd.f32 %v523_v11, %v1748_v8  ;;  %v413_v2 = vld [vmem:[%s1871_s17 + $0x60] sm:$0xff] }
  0xcb   : > { %v695_v17 = vpack.c.bf16 %v524_v16, %v522_v15 }
  0xcd   : > { %v495_v3 = vpop.f32.mrf.mxu3 }
  0xce   : > { %v496_v9 = vadd.f32 %v495_v3, %v1736_v1  ;;  %v551_v20 = vpop.f32.mrf.mxu2  ;;  %v404_v3 = vld [vmem:[%s1871_s17 + $0x18] sm:$0xff] }
  0xcf   : > { %v552_v7 = vadd.f32 %v551_v20, %v1760_v19  ;;  %v431_v19 = vld [vmem:[#allocation5 + $0x58] sm:$0xff]  ;;  %v1883_v20 = vld [vmem:[%s1989_s4] ss:$0 sm:$0xff]  ;;  %v970_v33 = vsel %vm959_vm1, %v404_v3, 0.0 }
  0xd0   : > { %v694_v10 = vpack.c.bf16 %v496_v9, %v494_v4  ;;  %v633_v13 = vpop.f32.mrf.mxu1  ;;  %880 = vperm.xlu1 %1408, %v404_v3   ;;  %v408_v4 = vld [vmem:[%s1871_s17 + $0x38] sm:$0xff]  ;;  %v401_v9 = vld [vmem:[%s1871_s17] sm:$0xff]  ;;  %v996_v3 = vsel %vm959_vm1, %v409_v63, 0.0 }
  0xd1   : > { %v634_v22 = vadd.f32 %v633_v13, %v1786_v46  ;;  %v696_v8 = vpack.c.bf16 %v552_v7, %v550_v28  ;;  %865 = vperm.xlu0 %1407, %v401_v9   ;;  %v960_v11 = vsel %vm959_vm1, %v401_v9, 0.0  ;;  %v988_v35 = vsel %vm959_vm1, %v408_v4, 0.0 }
  0xd2   : > { %1322 = vmatmul.msk.bf16.vlgmr.msrb.gmra.mxu0 %vm480_vm0, %v694_v10  ;;  %v402_v10 = vld [vmem:[%s1871_s17 + $0x8] sm:$0xff] }
  0xd3   : > { %v961_v12 = vsel %vm959_vm1, %v402_v10, 0.0 }
  0xd4   : > { %v962_v13 = vadd.f32 %v961_v12, %v960_v11 }
  0xd5   : > { %v577_v21 = vpop.f32.mrf.mxu3 }
  0xd6   : > { %v578_v43 = vadd.f32 %v577_v21, %v1765_v26  ;;  %v607_v26 = vpop.f32.mrf.mxu0  ;;  %v963_v15 = vrot.slane %v962_v13, 4  ;;  %v1886_v21 = vld [vmem:[%s1871_s17 + $0x50] sm:$0xff] }
  0xd7   : > { %v661_v24 = vpop.f32.mrf.mxu2  ;;  %v608_v53 = vadd.f32 %v607_v26, %v1781_v42  ;;  %v421_v42 = vld [vmem:[#allocation5 + $0x8] sm:$0xff] }
  0xd8   : > { %v635_v0 = vpop.f32.mrf.mxu1  ;;  %v662_v29 = vadd.f32 %v661_v24, %v1807_v5  ;;  %v808_v5 = vpack.c.bf16 %v431_v19, %v430_v14  ;;  %900 = vperm.xlu1 %1408, %v408_v4   ;;  %v987_v14 = vsel %vm959_vm1, %v407_v38, 0.0  ;;  %v410_v26 = vld [vmem:[%s1871_s17 + $0x48] sm:$0xff]  ;;  %v1014_v4 = vsel %vm959_vm1, %v413_v2, 0.0 }
  0xd9   : > { %v636_v1 = vadd.f32 %v635_v0, %v1789_v47  ;;  %870 = vperm.xlu0 %1407, %v402_v10   ;;  %v989_v19 = vadd.f32 %v988_v35, %v987_v14 }
  0xda   : > { %816 = vmatpush.bf16.msra.mxu1 %v808_v5  ;;  %1341 = vmatpush.bf16.msra.mxu2 %v808_v5 }
  0xdb   : > { %v699_v23 = vpack.c.bf16 %v636_v1, %v634_v22  ;;  %v990_v40 = vrot.slane %v989_v19, 4 }
  0xdd   : > { %1327 = vmatmul.msk.bf16.vlgmr.msrb.gmra.mxu3 %vm480_vm0, %v699_v23  ;;  %v579_v25 = vpop.f32.mrf.mxu3 }
  0xde   : > { %v580_v44 = vadd.f32 %v579_v25, %v1772_v31  ;;  %817 = vmatpush.bf16.msra.mxu1 %v807_v45  ;;  %1342 = vmatpush.bf16.msra.mxu2 %v807_v45  ;;  %v606_v31 = vadd.f32 %v605_v48, %v1778_v41  ;;  %v420_v41 = vld [vmem:[#allocation5] sm:$0xff] }
  0xdf   : > { %v663_v46 = vpop.f32.mrf.mxu2  ;;  %v803_v62 = vpack.c.bf16 %v421_v42, %v420_v41 }
  0xe0   : > { %v664_v47 = vadd.f32 %v663_v46, %v1810_v6  ;;  %v697_v51 = vpack.c.bf16 %v580_v44, %v578_v43  ;;  %v698_v54 = vpack.c.bf16 %v608_v53, %v606_v31  ;;  %915 = vperm.xlu1 %1408, %v1886_v21   ;;  %v414_v46 = vld [vmem:[%s1871_s17 + $0x68] sm:$0xff] }
  0xe1   : > { %895 = vperm.xlu0 %1407, %v407_v38   ;;  %v1015_v41 = vsel %vm959_vm1, %v414_v46, 0.0 }
  0xe2   : > { %1323 = vmatmul.msk.bf16.gmra.mxu0 %vm480_vm0, %v695_v17  ;;  %v700_v37 = vpack.c.bf16 %v664_v47, %v662_v29  ;;  %v964_v17 = vadd.f32 %v963_v15, %v962_v13  ;;  %v971_v47 = vadd.f32 %v970_v33, %v969_v32  ;;  %v1016_v12 = vadd.f32 %v1015_v41, %v1014_v4  ;;  %v412_v32 = vld [vmem:[%s1871_s17 + $0x58] sm:$0xff] }
  0xe3   : > { %v416_v33 = vld [vmem:[%s1871_s17 + $0x78] sm:$0xff] }
  0xe4   : > { %v965_v22 = vrot.slane %v964_v17, 2  ;;  %v972_v5 = vrot.slane %v971_v47, 4  ;;  %v1024_v38 = vsel %vm959_vm1, %v416_v33, 0.0 }
  0xe5   : > { %v689_v30 = vpop.f32.mrf.mxu3 }
  0xe6   : > { %v690_v49 = vadd.f32 %v689_v30, %v1814_v18  ;;  %v426_v18 = vld [vmem:[#allocation5 + $0x30] sm:$0xff]  ;;  %v966_v0 = vadd.f32 %v965_v22, %v964_v17  ;;  %v973_v45 = vadd.f32 %v972_v5, %v971_v47  ;;  %v1017_v22 = vrot.slane %v1016_v12, 4 }
  0xe7   : > { %v415_v5 = vld [vmem:[%s1871_s17 + $0x70] sm:$0xff] }
  0xe8   : > { %v967_v23 = vrot.slane %v966_v0, 1  ;;  %930 = vperm.xlu1 %1408, %v414_v46  }
  0xe9   : > { %910 = vperm.xlu0 %1407, %v410_v26  }
  0xea   : > { %v968_v28 = vadd.f32 %v967_v23, %v966_v0 }
  0xec   : > { %v1032_v29 = vmax.f32 %v968_v28, 1.0  ;;  %v1018_v28 = vadd.f32 %v1017_v22, %v1016_v12 }
  0xed   : > { %1328 = vmatmul.msk.bf16.gmra.mxu3 %vm480_vm0, %v700_v37  ;;  %v691_v6 = vpop.f32.mrf.mxu3  ;;  %v405_v37 = vld [vmem:[%s1871_s17 + $0x20] sm:$0xff] }
  0xee   : > { %v692_v50 = vadd.f32 %v691_v6, %v1823_v27  ;;  %v806_v27 = vpack.c.bf16 %v427_v55, %v426_v18  ;;  %1412 = vrcp.f32 %v1032_v29  ;;  %885 = vperm.xlu2 %1409, %v405_v37   ;;  %v991_v6 = vadd.f32 %v990_v40, %v989_v19 }
  0xef   : > { %v978_v48 = vsel %vm959_vm1, %v405_v37, 0.0  ;;  %v974_v55 = vrot.slane %v973_v45, 2 }
  0xf0   : > { %v701_v52 = vpack.c.bf16 %v692_v50, %v690_v49  ;;  %818 = vmatpush.bf16.msra.mxu1 %v806_v27  ;;  %1343 = vmatpush.bf16.msra.mxu2 %v806_v27 }
  0xf1   : > { %v975_v60 = vadd.f32 %v974_v55, %v973_v45  ;;  %925 = vperm.xlu0 %1407, %v413_v2  }
  0xf2   : > { %1324 = vmatmul.msk.bf16.gmra.mxu0 %vm480_vm0, %v696_v8 }
  0xf3   : > { %v976_v11 = vrot.slane %v975_v60, 1 }
  0xf4   : > { %819 = vmatpush.bf16.msra.mxu1 %v805_v58  ;;  %1344 = vmatpush.bf16.msra.mxu2 %v805_v58  ;;  %v1413_v36 = vpop.eup %1412 }
  0xf5   : > { %1106 = vperm.xlu1 %1408, %v1413_v36   ;;  %v1006_v36 = vsel %vm959_vm1, %v412_v32, 0.0 }
  0xf8   : > { %820 = vmatpush.bf16.msra.mxu1 %v804_v61  ;;  %1345 = vmatpush.bf16.msra.mxu2 %v804_v61  ;;  %v997_v61 = vsel %vm959_vm1, %v410_v26, 0.0 }
  0xf9   : > { %v998_v10 = vadd.f32 %v997_v61, %v996_v3  ;;  %940 = vperm.xlu0 %1407, %v416_v33  }
  0xfc   : > { %821 = vmatpush.bf16.msra.mxu1 %v803_v62  ;;  %1346 = vmatpush.bf16.msra.mxu2 %v803_v62 }
  0xfd   : > { %1329 = vmatmul.msk.bf16.gmra.mxu3 %vm480_vm0, %v701_v52  ;;  %v406_v52 = vld [vmem:[%s1871_s17 + $0x28] sm:$0xff] }
  0xfe   : > { %v979_v31 = vsel %vm959_vm1, %v406_v52, 0.0  ;;  %890 = vperm.xlu2 %1409, %v406_v52  }
  0xff   : > { %v980_v18 = vadd.f32 %v979_v31, %v978_v48 }
 0x101   : > { %v981_v56 = vrot.slane %v980_v18, 4 }
 0x102   : > { %1325 = vmatmul.msk.bf16.gmra.mxu0 %vm480_vm0, %v697_v51  ;;  %v992_v51 = vrot.slane %v991_v6, 2 }
 0x103   : > { %v982_v59 = vadd.f32 %v981_v56, %v980_v18 }
 0x105   : > { %v983_v62 = vrot.slane %v982_v59, 2 }
 0x106   : > { %905 = vperm.xlu2 %1409, %v409_v63  }
 0x107   : > { %v984_v9 = vadd.f32 %v983_v62, %v982_v59 }
 0x109   : > { %v985_v15 = vrot.slane %v984_v9, 1 }
 0x10e   : > { %920 = vperm.xlu2 %1409, %v412_v32  }
 0x112   : > { %1326 = vmatmul.msk.bf16.gmra.mxu0 %vm480_vm0, %v698_v54  ;;  %v993_v54 = vadd.f32 %v992_v51, %v991_v6 }
 0x114   : > { %v994_v27 = vrot.slane %v993_v54, 1 }
 0x116   : > { %v995_v58 = vadd.f32 %v994_v27, %v993_v54  ;;  %935 = vperm.xlu2 %1409, %v415_v5  }
 0x118   : > { %v1035_v42 = vmax.f32 %v995_v58, 1.0 }
 0x11a   : > { %1414 = vrcp.f32 %v1035_v42 }
 0x14f   : > { %v739_v16 = vpop.f32.mrf.mxu0 }
 0x150   : > { %v740_v1 = vadd.f32 %v1883_v20, %v739_v16  ;;  %v999_v16 = vrot.slane %v998_v10, 4 }
 0x152   : > { %v779_v7 = vmax.f32 %v740_v1, 0.0  ;;  %v986_v1 = vadd.f32 %v985_v15, %v984_v9  ;;  %v1000_v23 = vadd.f32 %v999_v16, %v998_v10 }
 0x154   : > { %v1034_v46 = vmax.f32 %v986_v1, 1.0 }
 0x156   : > { %1416 = vrcp.f32 %v1034_v46 }
 0x157   : > { %v741_v24 = vpop.f32.mrf.mxu0 }
 0x158   : > { %v742_v25 = vadd.f32 %v1883_v20, %v741_v24  ;;  %v977_v24 = vadd.f32 %v976_v11, %v975_v60 }
 0x15a   : > { %v780_v8 = vmax.f32 %v742_v25, 0.0  ;;  %v1005_v25 = vsel %vm959_vm1, %v1886_v21, 0.0  ;;  %v1033_v14 = vmax.f32 %v977_v24, 1.0 }
 0x15b   : > { %v1007_v21 = vadd.f32 %v1006_v36, %v1005_v25 }
 0x15c   : > { %v795_v30 = vpack.c.bf16 %v780_v8, %v779_v7  ;;  %v1415_v7 = vpop.eup %1414  ;;  %1418 = vrcp.f32 %v1033_v14 }
 0x15d   : > { %1121 = vperm.xlu1 %1408, %v1415_v7  }
 0x15e   : > { %822 = vmatmul.bf16.vlgmr.msra.gmra.mxu1 %v795_v30  ;;  %v1001_v30 = vrot.slane %v1000_v23, 2 }
 0x15f   : > { %v744_v34 = vpop.f32.mrf.mxu0 }
 0x160   : > { %v745_v39 = vadd.f32 %v1883_v20, %v744_v34  ;;  %v1019_v34 = vrot.slane %v1018_v28, 2  ;;  %v1002_v35 = vadd.f32 %v1001_v30, %v1000_v23  ;;  %v764_v10 = vpop.f32.mrf.mxu3 }
 0x161   : > { %v765_v25 = vadd.f32 %v1883_v20, %v764_v10 }
 0x162   : > { %v781_v49 = vmax.f32 %v745_v39, 0.0  ;;  %v1020_v37 = vadd.f32 %v1019_v34, %v1018_v28  ;;  %v1003_v19 = vrot.slane %v1002_v35, 1 }
 0x163   : > { %v789_v7 = vmax.f32 %v765_v25, 0.0 }
 0x164   : > { %v1021_v40 = vrot.slane %v1020_v37, 1 }
 0x166   : > { %v1022_v45 = vadd.f32 %v1021_v40, %v1020_v37 }
 0x167   : > { %v746_v43 = vpop.f32.mrf.mxu0 }
 0x168   : > { %v747_v44 = vadd.f32 %v1883_v20, %v746_v43  ;;  %v1008_v43 = vrot.slane %v1007_v21, 4  ;;  %v1038_v52 = vmax.f32 %v1022_v45, 1.0  ;;  %v766_v22 = vpop.f32.mrf.mxu3  ;;  %v876_v45 = vpop.permute.xlu1 %875 }
 0x169   : > { %v767_v28 = vadd.f32 %v1883_v20, %v766_v22 }
 0x16a   : > { %v782_v50 = vmax.f32 %v747_v44, 0.0  ;;  %v1023_v44 = vsel %vm959_vm1, %v415_v5, 0.0  ;;  %v1009_v48 = vadd.f32 %v1008_v43, %v1007_v21  ;;  %1420 = vrcp.f32 %v1038_v52 }
 0x16b   : > { %v1025_v6 = vadd.f32 %v1024_v38, %v1023_v44 }
 0x16c   : > { %v796_v53 = vpack.c.bf16 %v782_v50, %v781_v49  ;;  %v1417_v49 = vpop.eup %1416  ;;  %v1004_v50 = vadd.f32 %v1003_v19, %v1002_v35  ;;  %v1010_v26 = vrot.slane %v1009_v48, 2 }
 0x16d   : > { %v1026_v51 = vrot.slane %v1025_v6, 4  ;;  %1116 = vperm.xlu0 %1407, %v1417_v49   ;;  %v886_v49 = vpop.permute.xlu2 %885 }
 0x16e   : > { %827 = vmatmul.bf16.gmra.mxu1 %v796_v53  ;;  %v1011_v53 = vadd.f32 %v1010_v26, %v1009_v48  ;;  %v1036_v18 = vmax.f32 %v1004_v50, 1.0  ;;  %v866_v48 = vpop.permute.xlu0 %865 }
 0x16f   : > { %v749_v57 = vpop.f32.mrf.mxu0  ;;  %v1027_v31 = vadd.f32 %v1026_v51, %v1025_v6 }
 0x170   : > { %v750_v13 = vadd.f32 %v1883_v20, %v749_v57  ;;  %v1012_v56 = vrot.slane %v1011_v53, 1  ;;  %v1419_v57 = vpop.eup %1418  ;;  %1422 = vrcp.f32 %v1036_v18  ;;  %v769_v24 = vpop.f32.mrf.mxu3 }
 0x171   : > { %v1028_v55 = vrot.slane %v1027_v31, 2  ;;  %v1421_v62 = vpop.eup %1420  ;;  %1111 = vperm.xlu2 %1409, %v1419_v57   ;;  %v770_v30 = vadd.f32 %v1883_v20, %v769_v24  ;;  %v881_v52 = vpop.permute.xlu1 %880 }
 0x172   : > { %v783_v8 = vmax.f32 %v750_v13, 0.0  ;;  %v1013_v60 = vadd.f32 %v1012_v56, %v1011_v53  ;;  %1136 = vperm.xlu1 %1408, %v1421_v62   ;;  %v1933_v56 = vld [vmem:[%s1991_s6] ss:$0 sm:$0xff] }
 0x173   : > { %v1029_v59 = vadd.f32 %v1028_v55, %v1027_v31  ;;  %v791_v34 = vmax.f32 %v770_v30, 0.0 }
 0x174   : > { %v1037_v63 = vmax.f32 %v1013_v60, 1.0 }
 0x175   : > { %v1030_v42 = vrot.slane %v1029_v59, 1  ;;  %v891_v31 = vpop.permute.xlu2 %890 }
 0x176   : > { %1424 = vrcp.f32 %v1037_v63  ;;  %v1423_v11 = vpop.eup %1422  ;;  %v871_v26 = vpop.permute.xlu0 %870 }
 0x177   : > { %v751_v17 = vpop.f32.mrf.mxu0  ;;  %v1031_v3 = vadd.f32 %v1030_v42, %v1029_v59 }
 0x178   : > { %v752_v0 = vadd.f32 %v1883_v20, %v751_v17  ;;  %v771_v46 = vpop.f32.mrf.mxu3 }
 0x179   : > { %v1039_v4 = vmax.f32 %v1031_v3, 1.0  ;;  %1126 = vperm.xlu2 %1409, %v1423_v11   ;;  %v772_v32 = vadd.f32 %v1883_v20, %v771_v46 }
 0x17a   : > { %v784_v29 = vmax.f32 %v752_v0, 0.0 }
 0x17b   : > { %1426 = vrcp.f32 %v1039_v4 }
 0x17c   : > { %v797_v47 = vpack.c.bf16 %v784_v29, %v783_v8  ;;  %v1425_v12 = vpop.eup %1424  ;;  %v790_v8 = vmax.f32 %v767_v28, 0.0 }
 0x17d   : > { %1131 = vperm.xlu0 %1407, %v1425_v12  }
 0x17e   : > { %832 = vmatmul.bf16.gmra.mxu1 %v797_v47  ;;  %v800_v29 = vpack.c.bf16 %v790_v8, %v789_v7  ;;  %v792_v47 = vmax.f32 %v772_v32, 0.0  ;;  %v896_v18 = vpop.permute.xlu0 %895 }
 0x17f   : > { %v754_v39 = vpop.f32.mrf.mxu0 }
 0x180   : > { %v755_v54 = vadd.f32 %v1883_v20, %v754_v39  ;;  %v774_v33 = vpop.f32.mrf.mxu3  ;;  %v801_v35 = vpack.c.bf16 %v792_v47, %v791_v34 }
 0x181   : > { %v1427_v16 = vpop.eup %1426  ;;  %v775_v37 = vadd.f32 %v1883_v20, %v774_v33 }
 0x182   : > { %v785_v61 = vmax.f32 %v755_v54, 0.0  ;;  %1141 = vperm.xlu2 %1409, %v1427_v16   ;;  %v901_v54 = vpop.permute.xlu1 %900 }
 0x183   : > { %v793_v38 = vmax.f32 %v775_v37, 0.0 }
 0x186   : > { %v911_v60 = vpop.permute.xlu0 %910 }
 0x187   : > { %v756_v27 = vpop.f32.mrf.mxu0 }
 0x188   : > { %v757_v58 = vadd.f32 %v1883_v20, %v756_v27  ;;  %v776_v36 = vpop.f32.mrf.mxu3  ;;  %v906_v27 = vpop.permute.xlu2 %905 }
 0x189   : > { %v777_v21 = vadd.f32 %v1883_v20, %v776_v36 }
 0x18a   : > { %v786_v41 = vmax.f32 %v757_v58, 0.0  ;;  %v916_v58 = vpop.permute.xlu1 %915 }
 0x18b   : > { %v794_v14 = vmax.f32 %v777_v21, 0.0 }
 0x18c   : > { %v798_v2 = vpack.c.bf16 %v786_v41, %v785_v61 }
 0x18d   : > { %v802_v19 = vpack.c.bf16 %v794_v14, %v793_v38 }
 0x18e   : > { %837 = vmatmul.bf16.gmra.mxu1 %v798_v2  ;;  %v926_v36 = vpop.permute.xlu0 %925 }
 0x18f   : > { %v759_v9 = vpop.f32.mrf.mxu0 }
 0x190   : > { %v760_v13 = vadd.f32 %v1883_v20, %v759_v9  ;;  %v921_v12 = vpop.permute.xlu2 %920 }
 0x192   : > { %v787_v0 = vmax.f32 %v760_v13, 0.0 }
 0x197   : > { %v761_v15 = vpop.f32.mrf.mxu0 }
 0x198   : > { %v762_v17 = vadd.f32 %v1883_v20, %v761_v15 }
 0x19a   : > { %v788_v1 = vmax.f32 %v762_v17, 0.0 }
 0x19c   : > { %v799_v23 = vpack.c.bf16 %v788_v1, %v787_v0 }
 0x19e   : > { %842 = vmatmul.bf16.vlgmr.msra.gmra.mxu2 %v799_v23 }
 0x1ae   : > { %847 = vmatmul.bf16.gmra.mxu2 %v800_v29 }
 0x1be   : > { %852 = vmatmul.bf16.gmra.mxu2 %v801_v35  ;;  %v931_v35 = vpop.permute.xlu1 %930 }
 0x1ce   : > { %857 = vmatmul.bf16.gmra.mxu2 %v802_v19 }
 0x1db   : > { %v823_v5 = vpop.f32.mrf.mxu1 }
 0x1dc   : > { %v824_v2 = vadd.f32 %v1933_v56, %v823_v5 }
 0x1de   : > { %v943_v1 = vmul.f32 %v866_v48, %v824_v2 }
 0x1e3   : > { %v825_v39 = vpop.f32.mrf.mxu1 }
 0x1e4   : > { %v826_v42 = vadd.f32 %v1933_v56, %v825_v39 }
 0x1e6   : > { %v944_v16 = vmul.f32 %v871_v26, %v826_v42 }
 0x1e8   : > { %v1040_v32 = vadd.f32 %v944_v16, %v943_v1 }
 0x1ea   : > { %v1041_v39 = vrot.slane %v1040_v32, 4 }
 0x1eb   : > { %v828_v40 = vpop.f32.mrf.mxu1 }
 0x1ec   : > { %v829_v62 = vadd.f32 %v1933_v56, %v828_v40 }
 0x1ee   : > { %v945_v17 = vmul.f32 %v876_v45, %v829_v62 }
 0x1f3   : > { %v830_v43 = vpop.f32.mrf.mxu1 }
 0x1f4   : > { %v831_v59 = vadd.f32 %v1933_v56, %v830_v43 }
 0x1f6   : > { %v946_v9 = vmul.f32 %v881_v52, %v831_v59  ;;  %v1042_v52 = vadd.f32 %v1041_v39, %v1040_v32  ;;  %v1107_v59 = vpop.permute.xlu1 %1106 }
 0x1f8   : > { %v1047_v25 = vadd.f32 %v946_v9, %v945_v17 }
 0x1fa   : > { %v1048_v21 = vrot.slane %v1047_v25, 4 }
 0x1fb   : > { %v833_v44 = vpop.f32.mrf.mxu1 }
 0x1fc   : > { %v834_v3 = vadd.f32 %v1933_v56, %v833_v44  ;;  %v936_v44 = vpop.permute.xlu2 %935  ;;  %v1049_v45 = vadd.f32 %v1048_v21, %v1047_v25 }
 0x1fe   : > { %v947_v23 = vmul.f32 %v886_v49, %v834_v3 }
 0x203   : > { %v835_v51 = vpop.f32.mrf.mxu1 }
 0x204   : > { %v836_v61 = vadd.f32 %v1933_v56, %v835_v51  ;;  %v1112_v42 = vpop.permute.xlu2 %1111 }
 0x206   : > { %v948_v13 = vmul.f32 %v891_v31, %v836_v61 }
 0x208   : > { %v1054_v29 = vadd.f32 %v948_v13, %v947_v23 }
 0x20a   : > { %v1055_v5 = vrot.slane %v1054_v29, 4 }
 0x20b   : > { %v838_v20 = vpop.f32.mrf.mxu1 }
 0x20c   : > { %v839_v10 = vadd.f32 %v1933_v56, %v838_v20  ;;  %v1056_v49 = vadd.f32 %v1055_v5, %v1054_v29 }
 0x20e   : > { %v949_v28 = vmul.f32 %v896_v18, %v839_v10  ;;  %v1057_v18 = vrot.slane %v1056_v49, 2 }
 0x210   : > { %v1058_v62 = vadd.f32 %v1057_v18, %v1056_v49 }
 0x212   : > { %v1059_v16 = vrot.slane %v1058_v62, 1 }
 0x213   : > { %v840_v57 = vpop.f32.mrf.mxu1 }
 0x214   : > { %v841_v63 = vadd.f32 %v1933_v56, %v840_v57  ;;  %v1060_v29 = vadd.f32 %v1059_v16, %v1058_v62 }
 0x216   : > { %v950_v22 = vmul.f32 %v901_v54, %v841_v63  ;;  %v941_v54 = vpop.permute.xlu0 %940 }
 0x218   : > { %v1061_v33 = vadd.f32 %v950_v22, %v949_v28  ;;  %v1122_v28 = vpop.permute.xlu1 %1121 }
 0x21a   : > { %v1062_v40 = vrot.slane %v1061_v33, 4 }
 0x21c   : > { %v1063_v26 = vadd.f32 %v1062_v40, %v1061_v33 }
 0x21e   : > { %v1064_v57 = vrot.slane %v1063_v26, 2  ;;  %v1117_v23 = vpop.permute.xlu0 %1116 }
 0x221   : > { %v843_v6 = vpop.f32.mrf.mxu2 }
 0x222   : > { %v844_v15 = vadd.f32 %v1933_v56, %v843_v6 }
 0x224   : > { %v951_v46 = vmul.f32 %v906_v27, %v844_v15  ;;  %v1043_v27 = vrot.slane %v1042_v52, 2 }
 0x226   : > { %v1044_v3 = vadd.f32 %v1043_v27, %v1042_v52  ;;  %v1132_v39 = vpop.permute.xlu0 %1131 }
 0x228   : > { %v1045_v22 = vrot.slane %v1044_v3, 1 }
 0x229   : > { %v845_v50 = vpop.f32.mrf.mxu2 }
 0x22a   : > { %v846_v4 = vadd.f32 %v1933_v56, %v845_v50 }
 0x22c   : > { %v952_v24 = vmul.f32 %v911_v60, %v846_v4  ;;  %v1065_v4 = vadd.f32 %v1064_v57, %v1063_v26 }
 0x22e   : > { %v1068_v37 = vadd.f32 %v952_v24, %v951_v46  ;;  %v1127_v46 = vpop.permute.xlu2 %1126 }
 0x230   : > { %v1069_v6 = vrot.slane %v1068_v37, 4 }
 0x231   : > { %v848_v53 = vpop.f32.mrf.mxu2 }
 0x232   : > { %v849_v0 = vadd.f32 %v1933_v56, %v848_v53  ;;  %v1070_v31 = vadd.f32 %v1069_v6, %v1068_v37  ;;  %v1050_v53 = vrot.slane %v1049_v45, 2  ;;  %v1146_v37 = vmul.f32 %v1117_v23, %v1060_v29 }
 0x234   : > { %v953_v34 = vmul.f32 %v916_v58, %v849_v0  ;;  %v1071_v58 = vrot.slane %v1070_v31, 2  ;;  %v1051_v60 = vadd.f32 %v1050_v53, %v1049_v45  ;;  %v1066_v0 = vrot.slane %v1065_v4, 1 }
 0x236   : > { %v1072_v10 = vadd.f32 %v1071_v58, %v1070_v31  ;;  %v1067_v32 = vadd.f32 %v1066_v0, %v1065_v4  ;;  %v1142_v52 = vpop.permute.xlu2 %1141 }
 0x238   : > { %v1073_v24 = vrot.slane %v1072_v10, 1 }
 0x239   : > { %v850_v55 = vpop.f32.mrf.mxu2 }
 0x23a   : > { %v851_v11 = vadd.f32 %v1933_v56, %v850_v55 }
 0x23c   : > { %v954_v7 = vmul.f32 %v921_v12, %v851_v11  ;;  %v1052_v11 = vrot.slane %v1051_v60, 1 }
 0x23e   : > { %v1075_v38 = vadd.f32 %v954_v7, %v953_v34  ;;  %v1053_v25 = vadd.f32 %v1052_v11, %v1051_v60  ;;  %v1074_v34 = vadd.f32 %v1073_v24, %v1072_v10 }
 0x240   : > { %v1076_v48 = vrot.slane %v1075_v38, 4  ;;  %v1148_v5 = vmul.f32 %v1127_v46, %v1074_v34 }
 0x241   : > { %v853_v41 = vpop.f32.mrf.mxu2 }
 0x242   : > { %v854_v8 = vadd.f32 %v1933_v56, %v853_v41  ;;  %v1077_v20 = vadd.f32 %v1076_v48, %v1075_v38 }
 0x244   : > { %v955_v14 = vmul.f32 %v926_v36, %v854_v8  ;;  %v1078_v61 = vrot.slane %v1077_v20, 2 }
 0x246   : > { %v1079_v12 = vadd.f32 %v1078_v61, %v1077_v20 }
 0x248   : > { %v1080_v7 = vrot.slane %v1079_v12, 1 }
 0x249   : > { %v855_v30 = vpop.f32.mrf.mxu2 }
 0x24a   : > { %v856_v47 = vadd.f32 %v1933_v56, %v855_v30  ;;  %v1046_v30 = vadd.f32 %v1045_v22, %v1044_v3 }
 0x24c   : > { %v956_v19 = vmul.f32 %v931_v35, %v856_v47  ;;  %v1145_v47 = vmul.f32 %v1112_v42, %v1053_v25  ;;  %v1081_v35 = vadd.f32 %v1080_v7, %v1079_v12  ;;  %v1144_v38 = vmul.f32 %v1107_v59, %v1046_v30 }
 0x24e   : > { %v1082_v43 = vadd.f32 %v956_v19, %v955_v14  ;;  %v1147_v14 = vmul.f32 %v1122_v28, %v1067_v32  ;;  %v1161_v40 = vsel %vm1160_vm2, %v1145_v47, %v1144_v38 }
 0x24f   : > { %v1163_v45 = vsel %vm1162_vm3, %v1146_v37, %v1161_v40 }
 0x250   : > { %v1083_v50 = vrot.slane %v1082_v43, 4  ;;  %v1165_v49 = vsel %vm1164_vm4, %v1147_v14, %v1163_v45 }
 0x251   : > { %v858_v51 = vpop.f32.mrf.mxu2 }
 0x252   : > { %v1084_v55 = vadd.f32 %v1083_v50, %v1082_v43  ;;  %v859_v41 = vadd.f32 %v1933_v56, %v858_v51  ;;  %v1137_v43 = vpop.permute.xlu1 %1136  ;;  %v1167_v51 = vsel %vm1166_vm5, %v1148_v5, %v1165_v49 }
 0x254   : > { %v1085_v63 = vrot.slane %v1084_v55, 2  ;;  %v957_v13 = vmul.f32 %v936_v44, %v859_v41  ;;  %v1149_v44 = vmul.f32 %v1132_v39, %v1081_v35 }
 0x256   : > { %v1086_v17 = vadd.f32 %v1085_v63, %v1084_v55  ;;  %v1169_v31 = vsel %vm1168_vm6, %v1149_v44, %v1167_v51 }
 0x259   : > { %v860_v2 = vpop.f32.mrf.mxu2 }
 0x25a   : > { %v861_v9 = vadd.f32 %v1933_v56, %v860_v2  ;;  %v1087_v56 = vrot.slane %v1086_v17, 1 }
 0x25c   : > { %v958_v15 = vmul.f32 %v941_v54, %v861_v9  ;;  %v1088_v21 = vadd.f32 %v1087_v56, %v1086_v17 }
 0x25e   : > { %v1089_v1 = vadd.f32 %v958_v15, %v957_v13  ;;  %v1150_v48 = vmul.f32 %v1137_v43, %v1088_v21 }
 0x260   : > { %v1090_v8 = vrot.slane %v1089_v1, 4  ;;  %v1171_v53 = vsel %vm1170_vm7, %v1150_v48, %v1169_v31 }
 0x262   : > { %v1091_v33 = vadd.f32 %v1090_v8, %v1089_v1 }
 0x264   : > { %v1092_v36 = vrot.slane %v1091_v33, 2 }
 0x266   : > { %v1093_v19 = vadd.f32 %v1092_v36, %v1091_v33 }
 0x268   : > { %v1094_v6 = vrot.slane %v1093_v19, 1 }
 0x26a   : > { %v1095_v50 = vadd.f32 %v1094_v6, %v1093_v19 }
 0x26c   : > { %v1151_v26 = vmul.f32 %v1142_v52, %v1095_v50 }
 0x26e   : > { %v1173_v20 = vsel %vm1172_vm8, %v1151_v26, %v1171_v53 }
 0x26f   : > { %1175 = vst [vmem:[%s352_s29] sm:$0xff] %v1173_v20 }
 0x270   : > { %1515 = shalt.err (!%p1512_p12)
}
 0x271   : > { %1353 = dma.vmem_to_hbm [thread:$0]  (%p1673_p3), %s1190_s10, 128, %s1192_s11, %s1177_s12  }
 0x272 PF: > { %s1203_s23 = sand.u32 1, %s1546_s24   ;;  %p2004_p13 = scmp.ge.s32.totalorder %s1558_s27, 2 }
 0x273   : > { %s1204_s13 = scalar_lea.sflag [#allocation4], %s1203_s23 }
 0x274   : > { %p1364_p0 = pnand %p2004_p13, %p1639_p6 }
 0x276   : > { %p1365_p5 = pneg %p1364_p0 }
 0x278   : > { %1541 = dma.done.wait (%p1365_p5), %s1204_s13, 128  }
 0x279   : > { %1543 = vsyncadd (%p1365_p5), %s1204_s13, 4294967168  ;;  %p21_p7 = scmp.ge.s32.totalorder %s1657_s15, 4   ;;  %s2005_s24 = smov %s1550_s25 }
 0x27a   : > { %s2006_s25 = smov %s1554_s26  ;;  %s2007_s26 = smov %s1669_s20 }
 0x27b   : > { %s2008_s27 = smov %s1657_s15  ;;  %23 = sbr.rel (!%p21_p7) target bundleno = 8 (0x8), region = 103 }
 0x280   :  { %1210 = vsyncpa [#allocation3], 1 }
 0x281   :  { %1212 = vsyncpa [#allocation3 + $0x1], 1 }
 0x282   :  { %1213 = vsyncpa [#allocation6], 1 }
 0x283   :  { %1214 = vsyncpa [#allocation4], 1 }
 0x284   :  { %1216 = vsyncpa [#allocation4 + $0x1], 1 }

</bundles_post_ra>
